<compile_context>
chip_gen: v7x
topology: tpu7x:2x2x1
jax: 0.10.0
libtpu: 0.0.40
codegen_flags: <defaults>
</compile_context>

<pallas_src>
import jax
import jax.numpy as jnp
from jax.experimental import pallas as pl
from jax.experimental.pallas import tpu as pltpu

# ~2.5 MiB of data per operand per pipeline buffer: safe on v5e/v6e/v7x.
_TARGET_BLOCK_BYTES = 2_621_440
# 7 operands x 2 buffers x 2.5 MiB ~= 35 MiB -> 48 MiB limit leaves headroom
# and stays well inside v7x's 64 MiB physical VMEM.
_VMEM_LIMIT_BYTES = 48 * 1024 * 1024


def _pid_kernel(kp_ref, ki_ref, kd_ref, p_ref, i_ref, d_ref, out_ref):
    # Fused elementwise P + I + D on the VPU.
    out_ref[...] = (kp_ref[...] * p_ref[...]
                    + ki_ref[...] * i_ref[...]
                    + kd_ref[...] * d_ref[...])


def _choose_block_rows(rows_total, cols, itemsize, target_bytes):
    """Largest row-count whose (rows, cols) f32 block is <= target_bytes,
    rounded to a multiple of 8 (sublane-aligned), or the full row extent."""
    rows = max(1, target_bytes // max(1, cols * itemsize))
    if rows >= rows_total:
        return rows_total          # full array in one block
    rows = max(8, (rows // 8) * 8)  # sublane-aligned block shape
    return min(rows, rows_total)


def pid_forward(kp, ki, kd, p, i, d, *,
                target_block_bytes=_TARGET_BLOCK_BYTES,
                vmem_limit_bytes=_VMEM_LIMIT_BYTES):
    """Computes kp*p + ki*i + kd*d with a lane-dense, row-tiled Pallas kernel."""
    assert kp.shape == ki.shape == kd.shape == p.shape == i.shape == d.shape, \
        "all six operands must share a shape"
    orig_shape = kp.shape

    # Canonical 2-D view [R, C]; last dim stays on lanes.
    if kp.ndim == 0:
        R, C = 1, 1
    elif kp.ndim == 1:
        R, C = 1, orig_shape[0]
    else:
        C = orig_shape[-1]
        R = 1
        for s in orig_shape[:-1]:
            R *= s
    operands = [a.reshape(R, C) for a in (kp, ki, kd, p, i, d)]

    block_rows = _choose_block_rows(R, C, kp.dtype.itemsize, target_block_bytes)
    grid = (pl.cdiv(R, block_rows),)                 # 1-D grid over rows
    spec = pl.BlockSpec((block_rows, C), lambda r: (r, 0))  # full-width blocks

    out2d = pl.pallas_call(
        _pid_kernel,
        out_shape=jax.ShapeDtypeStruct((R, C), kp.dtype),
        grid_spec=pltpu.PrefetchScalarGridSpec(
            num_scalar_prefetch=0,
            grid=grid,
            in_specs=[spec] * 6,
            out_specs=spec,
        ),
        compiler_params=pltpu.CompilerParams(
            dimension_semantics=("parallel",),       # shards across v7x's 2 TCs
            vmem_limit_bytes=vmem_limit_bytes,
        ),
    )(*operands)
    return out2d.reshape(orig_shape)


if __name__ == "__main__":
    key = jax.random.PRNGKey(0)
    keys = jax.random.split(key, 12)

    # --- small correctness check (single large-as-possible block) ---
    shape = (64, 256)
    kp = jax.random.normal(keys[0], shape, dtype=jnp.float32)
    ki = jax.random.normal(keys[1], shape, dtype=jnp.float32)
    kd = jax.random.normal(keys[2], shape, dtype=jnp.float32)
    p = jax.random.normal(keys[3], shape, dtype=jnp.float32)
    i = jax.random.normal(keys[4], shape, dtype=jnp.float32)
    d = jax.random.normal(keys[5], shape, dtype=jnp.float32)

    out = pid_forward(kp, ki, kd, p, i, d)
    jax.block_until_ready(out)
    ref = kp * p + ki * i + kd * d
    assert jnp.allclose(out, ref, atol=1e-6, rtol=1e-6), "mismatch vs reference"

    # --- ragged-rows check: forces a multi-step grid with a partial tail block ---
    shape2 = (100, 256)  # 100 rows / block_rows=8 -> 13 steps, last one partial
    kp2 = jax.random.normal(keys[6], shape2, dtype=jnp.float32)
    ki2 = jax.random.normal(keys[7], shape2, dtype=jnp.float32)
    kd2 = jax.random.normal(keys[8], shape2, dtype=jnp.float32)
    p2 = jax.random.normal(keys[9], shape2, dtype=jnp.float32)
    i2 = jax.random.normal(keys[10], shape2, dtype=jnp.float32)
    d2 = jax.random.normal(keys[11], shape2, dtype=jnp.float32)

    out2 = pid_forward(kp2, ki2, kd2, p2, i2, d2,
                       target_block_bytes=8 * 256 * 4)  # force block_rows=8
    jax.block_until_ready(out2)
    ref2 = kp2 * p2 + ki2 * i2 + kd2 * d2
    assert jnp.allclose(out2, ref2, atol=1e-6, rtol=1e-6), "ragged-tail mismatch"

    # TODO(synk): the module's integral/prev_error buffers are unused in
    # forward() and therefore not modeled here.
    print("KERNEL_OK")
</pallas_src>

<mosaic_0001>
module attributes {stable_mosaic.version = 11 : i64} {
  func.func @_pid_kernel(%arg0: i32, %arg1: memref<64x256xf32, #tpu.memory_space<vmem>>, %arg2: memref<64x256xf32, #tpu.memory_space<vmem>>, %arg3: memref<64x256xf32, #tpu.memory_space<vmem>>, %arg4: memref<64x256xf32, #tpu.memory_space<vmem>>, %arg5: memref<64x256xf32, #tpu.memory_space<vmem>>, %arg6: memref<64x256xf32, #tpu.memory_space<vmem>>, %arg7: memref<64x256xf32, #tpu.memory_space<vmem>>) attributes {dimension_semantics = [#tpu.dimension_semantics<parallel>], iteration_bounds = array<i64: 1>, scalar_prefetch = 0 : i64, scratch_operands = 0 : i64, tpu.core_type = #tpu.core_type<tc>, window_params = [{transform_indices = @transform_0, window_bounds = array<i64: 64, 256>}, {transform_indices = @transform_1, window_bounds = array<i64: 64, 256>}, {transform_indices = @transform_2, window_bounds = array<i64: 64, 256>}, {transform_indices = @transform_3, window_bounds = array<i64: 64, 256>}, {transform_indices = @transform_4, window_bounds = array<i64: 64, 256>}, {transform_indices = @transform_5, window_bounds = array<i64: 64, 256>}, {transform_indices = @transform_6, window_bounds = array<i64: 64, 256>}]} {
    %c0 = arith.constant 0 : index
    %c0_0 = arith.constant 0 : index
    %0 = vector.load %arg1[%c0, %c0_0] : memref<64x256xf32, #tpu.memory_space<vmem>>, vector<64x256xf32>
    %c0_1 = arith.constant 0 : index
    %c0_2 = arith.constant 0 : index
    %1 = vector.load %arg4[%c0_1, %c0_2] : memref<64x256xf32, #tpu.memory_space<vmem>>, vector<64x256xf32>
    %2 = arith.mulf %0, %1 : vector<64x256xf32>
    %c0_3 = arith.constant 0 : index
    %c0_4 = arith.constant 0 : index
    %3 = vector.load %arg2[%c0_3, %c0_4] : memref<64x256xf32, #tpu.memory_space<vmem>>, vector<64x256xf32>
    %c0_5 = arith.constant 0 : index
    %c0_6 = arith.constant 0 : index
    %4 = vector.load %arg5[%c0_5, %c0_6] : memref<64x256xf32, #tpu.memory_space<vmem>>, vector<64x256xf32>
    %5 = arith.mulf %3, %4 : vector<64x256xf32>
    %6 = arith.addf %2, %5 : vector<64x256xf32>
    %c0_7 = arith.constant 0 : index
    %c0_8 = arith.constant 0 : index
    %7 = vector.load %arg3[%c0_7, %c0_8] : memref<64x256xf32, #tpu.memory_space<vmem>>, vector<64x256xf32>
    %c0_9 = arith.constant 0 : index
    %c0_10 = arith.constant 0 : index
    %8 = vector.load %arg6[%c0_9, %c0_10] : memref<64x256xf32, #tpu.memory_space<vmem>>, vector<64x256xf32>
    %9 = arith.mulf %7, %8 : vector<64x256xf32>
    %10 = arith.addf %6, %9 : vector<64x256xf32>
    %c0_11 = arith.constant 0 : index
    %c0_12 = arith.constant 0 : index
    %11 = vector.load %arg7[%c0_11, %c0_12] : memref<64x256xf32, #tpu.memory_space<vmem>>, vector<64x256xf32>
    tpu.vector_store %arg7[%c0_11, %c0_12], %10 {strides = array<i32>} : memref<64x256xf32, #tpu.memory_space<vmem>>, vector<64x256xf32>,
    return
  }
  func.func @transform_0(%arg0: i32) -> (i32, i32) {
    %c0_i32 = arith.constant 0 : i32
    %c0_i32_0 = arith.constant 0 : i32
    return %arg0, %c0_i32 : i32, i32
  }
  func.func @transform_1(%arg0: i32) -> (i32, i32) {
    %c0_i32 = arith.constant 0 : i32
    %c0_i32_0 = arith.constant 0 : i32
    return %arg0, %c0_i32 : i32, i32
  }
  func.func @transform_2(%arg0: i32) -> (i32, i32) {
    %c0_i32 = arith.constant 0 : i32
    %c0_i32_0 = arith.constant 0 : i32
    return %arg0, %c0_i32 : i32, i32
  }
  func.func @transform_3(%arg0: i32) -> (i32, i32) {
    %c0_i32 = arith.constant 0 : i32
    %c0_i32_0 = arith.constant 0 : i32
    return %arg0, %c0_i32 : i32, i32
  }
  func.func @transform_4(%arg0: i32) -> (i32, i32) {
    %c0_i32 = arith.constant 0 : i32
    %c0_i32_0 = arith.constant 0 : i32
    return %arg0, %c0_i32 : i32, i32
  }
  func.func @transform_5(%arg0: i32) -> (i32, i32) {
    %c0_i32 = arith.constant 0 : i32
    %c0_i32_0 = arith.constant 0 : i32
    return %arg0, %c0_i32 : i32, i32
  }
  func.func @transform_6(%arg0: i32) -> (i32, i32) {
    %c0_i32 = arith.constant 0 : i32
    %c0_i32_0 = arith.constant 0 : i32
    return %arg0, %c0_i32 : i32, i32
  }
}

</mosaic_0001>

<bundles_post_ra>
// kernel: tpu_custom_call.1
= control target key start
LH: loop header
LB: loop body
LE: loop exit
PB: predicated region body
PF: predicated region fallthrough
CT: control target
= control target key end

     0   :  { %11 = vsyncpa [#allocation3], 0  ;;  %s661_s0 = inlined_call_operand.hbm [shape: f32[64,256], index: 0, kind: input, shape index: {}]   ;;  %s662_s1 = inlined_call_operand.hbm [shape: f32[64,256], index: 1, kind: input, shape index: {}]   ;;  %s663_s2 = inlined_call_operand.hbm [shape: f32[64,256], index: 2, kind: input, shape index: {}]   ;;  %s664_s3 = inlined_call_operand.hbm [shape: f32[64,256], index: 3, kind: input, shape index: {}]   ;;  %s665_s4 = inlined_call_operand.hbm [shape: f32[64,256], index: 4, kind: input, shape index: {}]   ;;  %s666_s5 = inlined_call_operand.hbm [shape: f32[64,256], index: 5, kind: input, shape index: {}]   ;;  %s667_s6 = inlined_call_operand.hbm [shape: f32[64,256], index: 6, kind: output, shape index: {}]  }
   0x1   :  { %12 = vsyncpa [#allocation6], 0 }
   0x2   :  { %13 = vsyncpa [#allocation9], 0 }
   0x3   :  { %14 = vsyncpa [#allocation12], 0 }
   0x4   :  { %15 = vsyncpa [#allocation4], 0  ;;  %s491_s21 = smov [#allocation5]   ;;  %s492_s23 = smov [#allocation8]  }
   0x5   :  { %s33_s22 = sshll.u32 %s491_s21, 4  ;;  %s57_s24 = sshll.u32 %s492_s23, 4  ;;  %s34_s22 = int_to_ptr.vmem [resolvable:$true] %s33_s22  ;;  %s535_s24 = int_to_ptr.vmem [resolvable:$true] %s57_s24 }
   0x6   :  { %s327_s27 = scalar_lea.hbm %s662_s1, 2048 }
   0x7   :  { %p328_p0 = scmp.ne.s32.totalorder %s662_s1, %s327_s27  ;;  %p331_p1 = scmp.lt.u32.totalorder %s327_s27, %s662_s1 }
   0x9   :  { %p333_p2 = pnand %p331_p1, %p328_p0 }
   0xb   :  { %336 = shalt.err (!%p333_p2)
}
   0xc   :  { %s337_s8 = scalar_lea.vmem %s34_s22, 2048  ;;  %p342_p4 = scmp.lt.s32.totalorder %s34_s22, %s34_s22 }
   0xd   :  { %p338_p3 = scmp.ne.s32.totalorder %s34_s22, %s337_s8  ;;  %p343_p5 = scmp.lt.s32.totalorder %s337_s8, %s337_s8 }
   0xf   :  { %p344_p6 = por %p343_p5, %p342_p4 }
  0x11   :  { %p345_p7 = pnand %p344_p6, %p338_p3 }
  0x13   :  { %348 = shalt.err (!%p345_p7)
}
  0x14   :  { %s493_s9 = smov 256   ;;  %s494_s10 = smov 16  }
  0x15   :  { %39 = dma.hbm_to_vmem [thread:$0]  %s662_s1, 2048, %s34_s22, [#allocation6], %s493_s9, %s493_s9, %s494_s10  }
  0x16   :  { %s349_s15 = scalar_lea.hbm %s664_s3, 2048 }
  0x17   :  { %p350_p8 = scmp.ne.s32.totalorder %s664_s3, %s349_s15  ;;  %p353_p9 = scmp.lt.u32.totalorder %s349_s15, %s664_s3 }
  0x19   :  { %p355_p10 = pnand %p353_p9, %p350_p8 }
  0x1b   :  { %358 = shalt.err (!%p355_p10)
}
  0x1c   :  { %s359_s20 = scalar_lea.vmem %s535_s24, 2048  ;;  %p364_p12 = scmp.lt.s32.totalorder %s535_s24, %s535_s24 }
  0x1d   :  { %p360_p11 = scmp.ne.s32.totalorder %s535_s24, %s359_s20  ;;  %p365_p13 = scmp.lt.s32.totalorder %s359_s20, %s359_s20 }
  0x1f   :  { %p366_p0 = por %p365_p13, %p364_p12 }
  0x21   :  { %p367_p1 = pnand %p366_p0, %p360_p11 }
  0x23   :  { %370 = shalt.err (!%p367_p1)
}
  0x24   :  { %63 = dma.hbm_to_vmem [thread:$0]  %s664_s3, 2048, %s535_s24, [#allocation9], %s493_s9, %s493_s9, %s494_s10  }
  0x25   :  { %s495_s22 = smov [#allocation2]   ;;  %s496_s25 = smov [#allocation7]  }
  0x26   :  { %s21_s23 = sshll.u32 %s495_s22, 4  ;;  %s45_s26 = sshll.u32 %s496_s25, 4  ;;  %s22_s23 = int_to_ptr.vmem [resolvable:$true] %s21_s23  ;;  %s572_s26 = int_to_ptr.vmem [resolvable:$true] %s45_s26 }
  0x27   :  { %s371_s29 = scalar_lea.hbm %s661_s0, 2048 }
  0x28   :  { %p372_p2 = scmp.ne.s32.totalorder %s661_s0, %s371_s29  ;;  %p375_p3 = scmp.lt.u32.totalorder %s371_s29, %s661_s0 }
  0x2a   :  { %p377_p4 = pnand %p375_p3, %p372_p2 }
  0x2c   :  { %380 = shalt.err (!%p377_p4)
}
  0x2d   :  { %s381_s3 = scalar_lea.vmem %s22_s23, 2048  ;;  %p386_p6 = scmp.lt.s32.totalorder %s22_s23, %s22_s23 }
  0x2e   :  { %p382_p5 = scmp.ne.s32.totalorder %s22_s23, %s381_s3  ;;  %p387_p7 = scmp.lt.s32.totalorder %s381_s3, %s381_s3 }
  0x30   :  { %p388_p8 = por %p387_p7, %p386_p6 }
  0x32   :  { %p389_p9 = pnand %p388_p8, %p382_p5 }
  0x34   :  { %392 = shalt.err (!%p389_p9)
}
  0x35   :  { %27 = dma.hbm_to_vmem [thread:$0]  %s661_s0, 2048, %s22_s23, [#allocation3], %s493_s9, %s493_s9, %s494_s10  }
  0x36   :  { %s393_s15 = scalar_lea.hbm %s663_s2, 2048 }
  0x37   :  { %p394_p10 = scmp.ne.s32.totalorder %s663_s2, %s393_s15  ;;  %p397_p11 = scmp.lt.u32.totalorder %s393_s15, %s663_s2 }
  0x39   :  { %p399_p12 = pnand %p397_p11, %p394_p10 }
  0x3b   :  { %402 = shalt.err (!%p399_p12)
}
  0x3c   :  { %s403_s20 = scalar_lea.vmem %s572_s26, 2048  ;;  %p408_p0 = scmp.lt.s32.totalorder %s572_s26, %s572_s26 }
  0x3d   :  { %p404_p13 = scmp.ne.s32.totalorder %s572_s26, %s403_s20  ;;  %p409_p1 = scmp.lt.s32.totalorder %s403_s20, %s403_s20 }
  0x3f   :  { %p410_p2 = por %p409_p1, %p408_p0 }
  0x41   :  { %p411_p3 = pnand %p410_p2, %p404_p13 }
  0x43   :  { %414 = shalt.err (!%p411_p3)
}
  0x44   :  { %51 = dma.hbm_to_vmem [thread:$0]  %s663_s2, 2048, %s572_s26, [#allocation6], %s493_s9, %s493_s9, %s494_s10  }
  0x45   :  { %s497_s21 = smov [#allocation10]   ;;  %s498_s23 = smov [#allocation11]  }
  0x46   :  { %s69_s22 = sshll.u32 %s497_s21, 4  ;;  %s81_s25 = sshll.u32 %s498_s23, 4  ;;  %s70_s22 = int_to_ptr.vmem [resolvable:$true] %s69_s22  ;;  %s609_s25 = int_to_ptr.vmem [resolvable:$true] %s81_s25 }
  0x47   :  { %s415_s29 = scalar_lea.hbm %s665_s4, 2048 }
  0x48   :  { %p416_p4 = scmp.ne.s32.totalorder %s665_s4, %s415_s29  ;;  %p419_p5 = scmp.lt.u32.totalorder %s415_s29, %s665_s4 }
  0x4a   :  { %p421_p6 = pnand %p419_p5, %p416_p4 }
  0x4c   :  { %424 = shalt.err (!%p421_p6)
}
  0x4d   :  { %s425_s2 = scalar_lea.vmem %s70_s22, 2048  ;;  %p430_p8 = scmp.lt.s32.totalorder %s70_s22, %s70_s22 }
  0x4e   :  { %p426_p7 = scmp.ne.s32.totalorder %s70_s22, %s425_s2  ;;  %p431_p9 = scmp.lt.s32.totalorder %s425_s2, %s425_s2 }
  0x50   :  { %p432_p10 = por %p431_p9, %p430_p8 }
  0x52   :  { %p433_p11 = pnand %p432_p10, %p426_p7 }
  0x54   :  { %436 = shalt.err (!%p433_p11)
}
  0x55   :  { %75 = dma.hbm_to_vmem [thread:$0]  %s665_s4, 2048, %s70_s22, [#allocation9], %s493_s9, %s493_s9, %s494_s10  }
  0x56   :  { %s437_s13 = scalar_lea.hbm %s666_s5, 2048 }
  0x57   :  { %p438_p12 = scmp.ne.s32.totalorder %s666_s5, %s437_s13  ;;  %p441_p13 = scmp.lt.u32.totalorder %s437_s13, %s666_s5 }
  0x59   :  { %p443_p0 = pnand %p441_p13, %p438_p12 }
  0x5b   :  { %446 = shalt.err (!%p443_p0)
}
  0x5c   :  { %s447_s18 = scalar_lea.vmem %s609_s25, 2048  ;;  %p452_p2 = scmp.lt.s32.totalorder %s609_s25, %s609_s25 }
  0x5d   :  { %p448_p1 = scmp.ne.s32.totalorder %s609_s25, %s447_s18  ;;  %p453_p3 = scmp.lt.s32.totalorder %s447_s18, %s447_s18 }
  0x5f   :  { %p454_p4 = por %p453_p3, %p452_p2 }
  0x61   :  { %p455_p5 = pnand %p454_p4, %p448_p1 }
  0x63   :  { %458 = shalt.err (!%p455_p5)
}
  0x64   :  { %87 = dma.hbm_to_vmem [thread:$0]  %s666_s5, 2048, %s609_s25, [#allocation12], %s493_s9, %s493_s9, %s494_s10  }
  0x65   :  { %481 = dma.done.wait [#allocation3], 2048  }
  0x66   :  { %482 = vsyncadd [#allocation3], 4294965248 }
  0x67   :  { %483 = dma.done.wait [#allocation6], 4096  }
  0x68   :  { %484 = vsyncadd [#allocation6], 4294963200 }
  0x69   :  { %485 = dma.done.wait [#allocation9], 4096  }
  0x6a   :  { %486 = vsyncadd [#allocation9], 4294963200 }
  0x6b   :  { %487 = dma.done.wait [#allocation12], 2048  }
  0x6c   :  { %488 = vsyncadd [#allocation12], 4294965248  ;;  %v106_v0 = vld [vmem:[#allocation2] sm:$0xff]  ;;  %v107_v9 = vld [vmem:[#allocation2 + $0x8] sm:$0xff]  ;;  %s499_s5 = smov [#allocation13]  }
  0x6d   :  { %v122_v1 = vld [vmem:[#allocation8] sm:$0xff]  ;;  %v123_v10 = vld [vmem:[#allocation8 + $0x8] sm:$0xff]  ;;  %v108_v19 = vld [vmem:[#allocation2 + $0x10] sm:$0xff]  ;;  %s303_s20 = sshll.u32 %s499_s5, 4  ;;  %s304_s20 = int_to_ptr.vmem [resolvable:$true] %s303_s20 }
  0x6e   :  { %v154_v2 = vld [vmem:[#allocation5] sm:$0xff]  ;;  %v138_v3 = vmul.f32 %v122_v1, %v106_v0  ;;  %v155_v11 = vld [vmem:[#allocation5 + $0x8] sm:$0xff]  ;;  %v139_v12 = vmul.f32 %v123_v10, %v107_v9  ;;  %v124_v20 = vld [vmem:[#allocation8 + $0x10] sm:$0xff]  ;;  %s459_s0 = scalar_lea.vmem %s304_s20, 2048  ;;  %p464_p7 = scmp.lt.s32.totalorder %s304_s20, %s304_s20 }
  0x6f   :  { %v170_v4 = vld [vmem:[#allocation10] sm:$0xff]  ;;  %v171_v13 = vld [vmem:[#allocation10 + $0x8] sm:$0xff]  ;;  %v156_v21 = vld [vmem:[#allocation5 + $0x10] sm:$0xff]  ;;  %v140_v22 = vmul.f32 %v124_v20, %v108_v19  ;;  %p460_p6 = scmp.ne.s32.totalorder %s304_s20, %s459_s0  ;;  %p465_p8 = scmp.lt.s32.totalorder %s459_s0, %s459_s0 }
  0x70   :  { %v218_v5 = vld [vmem:[#allocation7] sm:$0xff]  ;;  %v186_v7 = vmul.f32 %v170_v4, %v154_v2  ;;  %v219_v14 = vld [vmem:[#allocation7 + $0x8] sm:$0xff]  ;;  %v187_v17 = vmul.f32 %v171_v13, %v155_v11  ;;  %v172_v23 = vld [vmem:[#allocation10 + $0x10] sm:$0xff] }
  0x71   :  { %v234_v6 = vld [vmem:[#allocation11] sm:$0xff]  ;;  %v235_v15 = vld [vmem:[#allocation11 + $0x8] sm:$0xff]  ;;  %v220_v24 = vld [vmem:[#allocation7 + $0x10] sm:$0xff]  ;;  %v188_v28 = vmul.f32 %v172_v23, %v156_v21  ;;  %p466_p9 = por %p465_p8, %p464_p7 }
  0x72   :  { %v250_v8 = vmul.f32 %v234_v6, %v218_v5  ;;  %v202_v16 = vadd.f32 %v186_v7, %v138_v3  ;;  %v251_v18 = vmul.f32 %v235_v15, %v219_v14  ;;  %v236_v25 = vld [vmem:[#allocation11 + $0x10] sm:$0xff]  ;;  %v203_v27 = vadd.f32 %v187_v17, %v139_v12  ;;  %v109_v30 = vld [vmem:[#allocation2 + $0x18] sm:$0xff]  ;;  %v110_v41 = vld [vmem:[#allocation2 + $0x20] sm:$0xff] }
  0x73   :  { %v252_v29 = vmul.f32 %v236_v25, %v220_v24  ;;  %v125_v31 = vld [vmem:[#allocation8 + $0x18] sm:$0xff]  ;;  %v204_v38 = vadd.f32 %v188_v28, %v140_v22  ;;  %v126_v42 = vld [vmem:[#allocation8 + $0x20] sm:$0xff]  ;;  %v111_v52 = vld [vmem:[#allocation2 + $0x28] sm:$0xff]  ;;  %p467_p10 = pnand %p466_p9, %p460_p6 }
  0x74   :  { %v266_v26 = vadd.f32 %v250_v8, %v202_v16  ;;  %v157_v32 = vld [vmem:[#allocation5 + $0x18] sm:$0xff]  ;;  %v141_v33 = vmul.f32 %v125_v31, %v109_v30  ;;  %v267_v37 = vadd.f32 %v251_v18, %v203_v27  ;;  %v158_v43 = vld [vmem:[#allocation5 + $0x20] sm:$0xff]  ;;  %v142_v44 = vmul.f32 %v126_v42, %v110_v41  ;;  %v127_v53 = vld [vmem:[#allocation8 + $0x28] sm:$0xff] }
  0x75   :  { %v173_v34 = vld [vmem:[#allocation10 + $0x18] sm:$0xff]  ;;  %v174_v45 = vld [vmem:[#allocation10 + $0x20] sm:$0xff]  ;;  %v268_v48 = vadd.f32 %v252_v29, %v204_v38  ;;  %v159_v54 = vld [vmem:[#allocation5 + $0x28] sm:$0xff]  ;;  %v143_v55 = vmul.f32 %v127_v53, %v111_v52 }
  0x76   :  { %v221_v35 = vld [vmem:[#allocation7 + $0x18] sm:$0xff]  ;;  %282 = vst [vmem:[#allocation13] sm:$0xff] %v266_v26  ;;  %v189_v39 = vmul.f32 %v173_v34, %v157_v32  ;;  %v222_v46 = vld [vmem:[#allocation7 + $0x20] sm:$0xff]  ;;  %283 = vst [vmem:[#allocation13 + $0x8] sm:$0xff] %v267_v37  ;;  %v190_v50 = vmul.f32 %v174_v45, %v158_v43 }
  0x77   :  { %v237_v36 = vld [vmem:[#allocation11 + $0x18] sm:$0xff]  ;;  %v238_v47 = vld [vmem:[#allocation11 + $0x20] sm:$0xff]  ;;  %v175_v56 = vld [vmem:[#allocation10 + $0x28] sm:$0xff]  ;;  %284 = vst [vmem:[#allocation13 + $0x10] sm:$0xff] %v268_v48 }
  0x78   :  { %v253_v40 = vmul.f32 %v237_v36, %v221_v35  ;;  %v205_v49 = vadd.f32 %v189_v39, %v141_v33  ;;  %v254_v51 = vmul.f32 %v238_v47, %v222_v46  ;;  %v223_v57 = vld [vmem:[#allocation7 + $0x28] sm:$0xff]  ;;  %v206_v60 = vadd.f32 %v190_v50, %v142_v44  ;;  %v112_v63 = vld [vmem:[#allocation2 + $0x30] sm:$0xff]  ;;  %v113_v10 = vld [vmem:[#allocation2 + $0x38] sm:$0xff] }
  0x79   :  { %v239_v58 = vld [vmem:[#allocation11 + $0x28] sm:$0xff]  ;;  %v191_v61 = vmul.f32 %v175_v56, %v159_v54  ;;  %v128_v0 = vld [vmem:[#allocation8 + $0x30] sm:$0xff]  ;;  %v129_v11 = vld [vmem:[#allocation8 + $0x38] sm:$0xff] }
  0x7a   :  { %v269_v59 = vadd.f32 %v253_v40, %v205_v49  ;;  %v255_v62 = vmul.f32 %v239_v58, %v223_v57  ;;  %v160_v1 = vld [vmem:[#allocation5 + $0x30] sm:$0xff]  ;;  %v144_v2 = vmul.f32 %v128_v0, %v112_v63  ;;  %v270_v6 = vadd.f32 %v254_v51, %v206_v60  ;;  %v161_v12 = vld [vmem:[#allocation5 + $0x38] sm:$0xff]  ;;  %v114_v21 = vld [vmem:[#allocation2 + $0x40] sm:$0xff] }
  0x7b   :  { %v176_v3 = vld [vmem:[#allocation10 + $0x30] sm:$0xff]  ;;  %v207_v7 = vadd.f32 %v191_v61, %v143_v55  ;;  %v145_v13 = vmul.f32 %v129_v11, %v113_v10  ;;  %v177_v14 = vld [vmem:[#allocation10 + $0x38] sm:$0xff]  ;;  %v130_v22 = vld [vmem:[#allocation8 + $0x40] sm:$0xff] }
  0x7c   :  { %v224_v4 = vld [vmem:[#allocation7 + $0x30] sm:$0xff]  ;;  %285 = vst [vmem:[#allocation13 + $0x18] sm:$0xff] %v269_v59  ;;  %v192_v8 = vmul.f32 %v176_v3, %v160_v1  ;;  %v225_v15 = vld [vmem:[#allocation7 + $0x38] sm:$0xff]  ;;  %286 = vst [vmem:[#allocation13 + $0x20] sm:$0xff] %v270_v6  ;;  %v193_v19 = vmul.f32 %v177_v14, %v161_v12  ;;  %v146_v24 = vmul.f32 %v130_v22, %v114_v21 }
  0x7d   :  { %v240_v5 = vld [vmem:[#allocation11 + $0x30] sm:$0xff]  ;;  %v241_v16 = vld [vmem:[#allocation11 + $0x38] sm:$0xff]  ;;  %v271_v17 = vadd.f32 %v255_v62, %v207_v7  ;;  %v162_v23 = vld [vmem:[#allocation5 + $0x40] sm:$0xff] }
  0x7e   :  { %v256_v9 = vmul.f32 %v240_v5, %v224_v4  ;;  %v208_v18 = vadd.f32 %v192_v8, %v144_v2  ;;  %v257_v20 = vmul.f32 %v241_v16, %v225_v15  ;;  %v178_v25 = vld [vmem:[#allocation10 + $0x40] sm:$0xff]  ;;  %v209_v29 = vadd.f32 %v193_v19, %v145_v13  ;;  %v115_v32 = vld [vmem:[#allocation2 + $0x48] sm:$0xff]  ;;  %v116_v43 = vld [vmem:[#allocation2 + $0x50] sm:$0xff] }
  0x7f   :  { %v226_v26 = vld [vmem:[#allocation7 + $0x40] sm:$0xff]  ;;  %287 = vst [vmem:[#allocation13 + $0x28] sm:$0xff] %v271_v17  ;;  %v194_v30 = vmul.f32 %v178_v25, %v162_v23  ;;  %v131_v33 = vld [vmem:[#allocation8 + $0x48] sm:$0xff]  ;;  %v132_v44 = vld [vmem:[#allocation8 + $0x50] sm:$0xff] }
  0x80   :  { %v242_v27 = vld [vmem:[#allocation11 + $0x40] sm:$0xff]  ;;  %v272_v28 = vadd.f32 %v256_v9, %v208_v18  ;;  %v163_v34 = vld [vmem:[#allocation5 + $0x48] sm:$0xff]  ;;  %v147_v35 = vmul.f32 %v131_v33, %v115_v32  ;;  %v273_v39 = vadd.f32 %v257_v20, %v209_v29  ;;  %v164_v45 = vld [vmem:[#allocation5 + $0x50] sm:$0xff]  ;;  %v148_v46 = vmul.f32 %v132_v44, %v116_v43 }
  0x81   :  { %v258_v31 = vmul.f32 %v242_v27, %v226_v26  ;;  %v179_v36 = vld [vmem:[#allocation10 + $0x48] sm:$0xff]  ;;  %v210_v40 = vadd.f32 %v194_v30, %v146_v24  ;;  %v180_v47 = vld [vmem:[#allocation10 + $0x50] sm:$0xff]  ;;  %v117_v54 = vld [vmem:[#allocation2 + $0x58] sm:$0xff] }
  0x82   :  { %v227_v37 = vld [vmem:[#allocation7 + $0x48] sm:$0xff]  ;;  %288 = vst [vmem:[#allocation13 + $0x30] sm:$0xff] %v272_v28  ;;  %v195_v41 = vmul.f32 %v179_v36, %v163_v34  ;;  %v228_v48 = vld [vmem:[#allocation7 + $0x50] sm:$0xff]  ;;  %289 = vst [vmem:[#allocation13 + $0x38] sm:$0xff] %v273_v39  ;;  %v196_v52 = vmul.f32 %v180_v47, %v164_v45 }
  0x83   :  { %v243_v38 = vld [vmem:[#allocation11 + $0x48] sm:$0xff]  ;;  %v244_v49 = vld [vmem:[#allocation11 + $0x50] sm:$0xff]  ;;  %v274_v50 = vadd.f32 %v258_v31, %v210_v40  ;;  %v133_v55 = vld [vmem:[#allocation8 + $0x58] sm:$0xff] }
  0x84   :  { %v259_v42 = vmul.f32 %v243_v38, %v227_v37  ;;  %v211_v51 = vadd.f32 %v195_v41, %v147_v35  ;;  %v260_v53 = vmul.f32 %v244_v49, %v228_v48  ;;  %v165_v56 = vld [vmem:[#allocation5 + $0x58] sm:$0xff]  ;;  %v149_v57 = vmul.f32 %v133_v55, %v117_v54  ;;  %v118_v1 = vld [vmem:[#allocation2 + $0x60] sm:$0xff]  ;;  %v119_v12 = vld [vmem:[#allocation2 + $0x68] sm:$0xff] }
  0x85   :  { %v181_v58 = vld [vmem:[#allocation10 + $0x58] sm:$0xff]  ;;  %290 = vst [vmem:[#allocation13 + $0x40] sm:$0xff] %v274_v50  ;;  %v212_v62 = vadd.f32 %v196_v52, %v148_v46  ;;  %v134_v2 = vld [vmem:[#allocation8 + $0x60] sm:$0xff]  ;;  %v135_v13 = vld [vmem:[#allocation8 + $0x68] sm:$0xff] }
  0x86   :  { %v229_v59 = vld [vmem:[#allocation7 + $0x58] sm:$0xff]  ;;  %v275_v61 = vadd.f32 %v259_v42, %v211_v51  ;;  %v197_v63 = vmul.f32 %v181_v58, %v165_v56  ;;  %v166_v3 = vld [vmem:[#allocation5 + $0x60] sm:$0xff]  ;;  %v150_v4 = vmul.f32 %v134_v2, %v118_v1  ;;  %v167_v14 = vld [vmem:[#allocation5 + $0x68] sm:$0xff]  ;;  %v151_v15 = vmul.f32 %v135_v13, %v119_v12 }
  0x87   :  { %v245_v60 = vld [vmem:[#allocation11 + $0x58] sm:$0xff]  ;;  %v182_v5 = vld [vmem:[#allocation10 + $0x60] sm:$0xff]  ;;  %v276_v8 = vadd.f32 %v260_v53, %v212_v62  ;;  %v183_v16 = vld [vmem:[#allocation10 + $0x68] sm:$0xff] }
  0x88   :  { %v261_v0 = vmul.f32 %v245_v60, %v229_v59  ;;  %v230_v6 = vld [vmem:[#allocation7 + $0x60] sm:$0xff]  ;;  %291 = vst [vmem:[#allocation13 + $0x48] sm:$0xff] %v275_v61  ;;  %v213_v9 = vadd.f32 %v197_v63, %v149_v57  ;;  %v198_v10 = vmul.f32 %v182_v5, %v166_v3  ;;  %v231_v17 = vld [vmem:[#allocation7 + $0x68] sm:$0xff]  ;;  %v199_v21 = vmul.f32 %v183_v16, %v167_v14  ;;  %v120_v23 = vld [vmem:[#allocation2 + $0x70] sm:$0xff] }
  0x89   :  { %v246_v7 = vld [vmem:[#allocation11 + $0x60] sm:$0xff]  ;;  %v247_v18 = vld [vmem:[#allocation11 + $0x68] sm:$0xff]  ;;  %292 = vst [vmem:[#allocation13 + $0x50] sm:$0xff] %v276_v8  ;;  %v136_v24 = vld [vmem:[#allocation8 + $0x70] sm:$0xff] }
  0x8a   :  { %v262_v11 = vmul.f32 %v246_v7, %v230_v6  ;;  %v277_v19 = vadd.f32 %v261_v0, %v213_v9  ;;  %v214_v20 = vadd.f32 %v198_v10, %v150_v4  ;;  %v263_v22 = vmul.f32 %v247_v18, %v231_v17  ;;  %v168_v25 = vld [vmem:[#allocation5 + $0x70] sm:$0xff]  ;;  %v121_v34 = vld [vmem:[#allocation2 + $0x78] sm:$0xff] }
  0x8b   :  { %v152_v26 = vmul.f32 %v136_v24, %v120_v23  ;;  %v184_v27 = vld [vmem:[#allocation10 + $0x70] sm:$0xff]  ;;  %v215_v31 = vadd.f32 %v199_v21, %v151_v15  ;;  %v137_v35 = vld [vmem:[#allocation8 + $0x78] sm:$0xff] }
  0x8c   :  { %v232_v28 = vld [vmem:[#allocation7 + $0x70] sm:$0xff]  ;;  %293 = vst [vmem:[#allocation13 + $0x58] sm:$0xff] %v277_v19  ;;  %v278_v30 = vadd.f32 %v262_v11, %v214_v20  ;;  %v200_v32 = vmul.f32 %v184_v27, %v168_v25  ;;  %v169_v36 = vld [vmem:[#allocation5 + $0x78] sm:$0xff]  ;;  %v153_v37 = vmul.f32 %v137_v35, %v121_v34 }
  0x8d   :  { %v248_v29 = vld [vmem:[#allocation11 + $0x70] sm:$0xff]  ;;  %v185_v38 = vld [vmem:[#allocation10 + $0x78] sm:$0xff]  ;;  %v279_v41 = vadd.f32 %v263_v22, %v215_v31 }
  0x8e   :  { %v264_v33 = vmul.f32 %v248_v29, %v232_v28  ;;  %v233_v39 = vld [vmem:[#allocation7 + $0x78] sm:$0xff]  ;;  %294 = vst [vmem:[#allocation13 + $0x60] sm:$0xff] %v278_v30  ;;  %v216_v42 = vadd.f32 %v200_v32, %v152_v26  ;;  %v201_v43 = vmul.f32 %v185_v38, %v169_v36 }
  0x8f   :  { %v249_v40 = vld [vmem:[#allocation11 + $0x78] sm:$0xff]  ;;  %295 = vst [vmem:[#allocation13 + $0x68] sm:$0xff] %v279_v41 }
  0x90   :  { %v265_v44 = vmul.f32 %v249_v40, %v233_v39  ;;  %v280_v45 = vadd.f32 %v264_v33, %v216_v42  ;;  %v217_v46 = vadd.f32 %v201_v43, %v153_v37 }
  0x92   :  { %296 = vst [vmem:[#allocation13 + $0x70] sm:$0xff] %v280_v45  ;;  %v281_v47 = vadd.f32 %v265_v44, %v217_v46 }
  0x94   :  { %297 = vst [vmem:[#allocation13 + $0x78] sm:$0xff] %v281_v47 }
  0x95   :  { %470 = shalt.err (!%p467_p10)
}
  0x96   :  { %s471_s22 = scalar_lea.hbm %s667_s6, 2048 }
  0x97   :  { %p472_p11 = scmp.ne.s32.totalorder %s667_s6, %s471_s22  ;;  %p475_p12 = scmp.lt.u32.totalorder %s471_s22, %s667_s6 }
  0x99   :  { %p477_p13 = pnand %p475_p12, %p472_p11 }
  0x9b   :  { %480 = shalt.err (!%p477_p13)
}
  0x9c   :  { %309 = dma.vmem_to_hbm [thread:$0]  %s304_s20, 2048, %s667_s6, [#allocation4], %s493_s9, %s493_s9, %s494_s10  }
  0x9d   :  { %489 = dma.done.wait [#allocation4], 2048  }
  0x9e   :  { %490 = vsyncadd [#allocation4], 4294965248 }
  0x9f   :  { %313 = vsyncpa [#allocation3], 1 }
  0xa0   :  { %314 = vsyncpa [#allocation6], 1 }
  0xa1   :  { %315 = vsyncpa [#allocation9], 1 }
  0xa2   :  { %316 = vsyncpa [#allocation12], 1 }
  0xa3   :  { %317 = vsyncpa [#allocation4], 1 }

</bundles_post_ra>
